<compile_context>
chip_gen: v7x
topology: tpu7x:2x2x1
jax: 0.10.0
libtpu: 0.0.40
codegen_flags: <defaults>
</compile_context>

<pallas_src>
import functools

import jax
import jax.numpy as jnp
import numpy as np
from jax.experimental import pallas as pl
from jax.experimental.pallas import tpu as pltpu

LANES = 128  # pad tiny channel/class dims to a full lane tile -> unmasked stores


# ----------------------------- Pallas kernels ------------------------------

def _client_fused_kernel(p_ref, cw_ref, cb_ref, sel_ref, ts_ref, emb_ref, *, n_pool):
    """Fused conv-as-matmul + bias + ReLU + 2x2 max-pool + spatial mean (one image).

    p_ref  : (1, 4*n_pool, 9*Cin) im2col rows; the 4 pool partners of pooled
             pixel r live at rows {q*n_pool + r : q = 0..3} (q = 2x2 parity).
    cw_ref : (9*Cin, Cout)   conv weight as a matmul operand
    cb_ref : (1, Cout)       conv bias
    sel_ref: (Cout, LANES)   (1/n_pool) * [I_Cout | 0]  -> mean + lane padding
    ts_ref : (1, n_pool, Cout)  pooled cut-layer activation ("to_server")
    emb_ref: (1, 1, LANES)      client embedding, lane-padded
    """
    n = n_pool
    # conv + bias + ReLU on the MXU/VPU (all data stays in VMEM from here on)
    y = jnp.dot(p_ref[0], cw_ref[...], preferred_element_type=jnp.float32)
    y = jnp.maximum(y + cb_ref[...], 0.0)                              # (4n, Cout)
    # 2x2 max-pool == max over the 4 contiguous, 8-aligned row blocks
    pooled = jnp.maximum(jnp.maximum(y[0 * n:1 * n], y[1 * n:2 * n]),
                         jnp.maximum(y[2 * n:3 * n], y[3 * n:4 * n]))  # (n, Cout)
    ts_ref[0] = pooled
    # spatial mean: (pooled @ sel) folds the 1/n and the zero lane-padding into a
    # matmul, then a sublane reduction -> a single dense 128-lane store.
    emb_ref[0] = jnp.sum(
        jnp.dot(pooled, sel_ref[...], preferred_element_type=jnp.float32),
        axis=0, keepdims=True)


def _linear_kernel(x_ref, w_ref, b_ref, o_ref):
    """Server head for the whole batch: (B, F) @ (F, NPAD) + bias, lane-padded logits."""
    o_ref[...] = (jnp.dot(x_ref[...], w_ref[...], preferred_element_type=jnp.float32)
                  + b_ref[...])


# ----------------------------- kernel wrappers ------------------------------

def client_fused(patches, cw, cb, sel, n_pool, cout):
    b, rows, k = patches.shape
    assert rows == 4 * n_pool
    kernel = functools.partial(_client_fused_kernel, n_pool=n_pool)
    ts, emb = pl.pallas_call(
        kernel,
        out_shape=(jax.ShapeDtypeStruct((b, n_pool, cout), jnp.float32),
                   jax.ShapeDtypeStruct((b, 1, LANES), jnp.float32)),
        grid=(b,),
        in_specs=[
            pl.BlockSpec((1, 4 * n_pool, k), lambda i: (i, 0, 0)),
            pl.BlockSpec((k, cout), lambda i: (0, 0)),      # resident weight
            pl.BlockSpec((1, cout), lambda i: (0, 0)),      # resident bias
            pl.BlockSpec((cout, LANES), lambda i: (0, 0)),  # resident mean-selector
        ],
        out_specs=(pl.BlockSpec((1, n_pool, cout), lambda i: (i, 0, 0)),
                   pl.BlockSpec((1, 1, LANES), lambda i: (i, 0, 0))),
        compiler_params=pltpu.CompilerParams(dimension_semantics=("parallel",)),
    )(patches, cw, cb, sel)
    return ts, emb


def linear_padded(feat, w_pad, b_pad):
    """Server linear head: one grid step over the whole (tiny) batch."""
    b, f = feat.shape
    npad = w_pad.shape[1]
    return pl.pallas_call(
        _linear_kernel,
        out_shape=jax.ShapeDtypeStruct((b, npad), jnp.float32),
        grid=(1,),
        in_specs=[
            pl.BlockSpec((b, f), lambda i: (0, 0)),
            pl.BlockSpec((f, npad), lambda i: (0, 0)),       # resident weight
            pl.BlockSpec((1, npad), lambda i: (0, 0)),       # resident bias
        ],
        out_specs=pl.BlockSpec((b, npad), lambda i: (0, 0)),
        compiler_params=pltpu.CompilerParams(dimension_semantics=("arbitrary",)),
    )(feat, w_pad, b_pad)


# ----------------------------- model forward (glue) -------------------------

def client_forward(params, x_nchw):
    """Client model: conv3x3(pad=1) + ReLU + maxpool2x2, returns (to_server, emb)."""
    x = jnp.transpose(x_nchw, (0, 2, 3, 1)).astype(jnp.float32)   # NCHW -> NHWC
    B, H, W, Cin = x.shape
    assert H % 2 == 0 and W % 2 == 0, "2x2 max-pool needs even spatial dims"
    Hp, Wp = H // 2, W // 2
    n_pool = Hp * Wp
    K = 9 * Cin
    cout = params["conv_w"].shape[-1]

    # im2col glue on the (tiny) input.  Rows are ordered (ph, pw, hp, wp) so the
    # in-kernel 2x2 max-pool is a max over 4 contiguous row blocks -- no strided
    # access and no HBM round trip of the conv activation.
    # TODO(synk): at realistic H/W/Cin, do this halo gather in-kernel (manual DMA
    # of the padded NHWC tile) to avoid the 9x patch inflation through HBM.
    xp = jnp.pad(x, ((0, 0), (1, 1), (1, 1), (0, 0)))
    cols = [xp[:, kh:kh + H, kw:kw + W, :] for kh in range(3) for kw in range(3)]
    patches = jnp.concatenate(cols, axis=-1)                       # (B, H, W, 9*Cin)
    patches = (patches.reshape(B, Hp, 2, Wp, 2, K)
                      .transpose(0, 2, 4, 1, 3, 5)                 # (B, ph, pw, hp, wp, K)
                      .reshape(B, 4 * n_pool, K))

    cw = params["conv_w"].reshape(K, cout)        # (kh,kw,cin,cout) -> (9*Cin, Cout)
    cb = params["conv_b"].reshape(1, cout)
    sel = jnp.eye(cout, LANES, dtype=jnp.float32) / float(n_pool)  # mean + lane pad

    ts, emb = client_fused(patches, cw, cb, sel, n_pool, cout)
    to_server = ts.reshape(B, Hp, Wp, cout)       # NHWC cut-layer activation
    client_emb = emb.reshape(B, LANES)[:, :cout]  # (B, Cout) client embedding
    return to_server, client_emb


def server_forward(params, to_server):
    B = to_server.shape[0]
    feat = to_server.reshape(B, -1)               # flatten order (H, W, C)
    logits_pad = linear_padded(feat, params["fc_w_pad"], params["fc_b_pad"])
    return logits_pad[:, :params["fc_w"].shape[1]]


@functools.partial(jax.jit, static_argnames=("i", "out", "interrupt"))
def splitnn_forward(client_params, server_params, inputs, i=0, out=True,
                    flops=0, interrupt=False):
    """Mirrors SplitNN.forward: clients[f'alice{i}'] -> bob[0] (non-masked server)."""
    to_server, client_emb = client_forward(client_params[i], inputs)
    to_server_stopped = to_server   # forward-only; .detach() is a no-op here
    output = client_emb
    # TODO(synk): compute_flops / compute_comm_cost are external profiling helpers
    # in the original repo; approximated here by simple element counts.
    client_flops = 0
    if out:
        send_server_cost = int(to_server_stopped.size)
        if output is None:
            output = to_server
        # non-masked server path (not MaskedResNet / MaskedLeNet)
        output_final = server_forward(server_params, to_server_stopped)
        return (output, to_server, output_final,
                flops + client_flops, client_flops, send_server_cost)
    return (output, to_server, flops + client_flops)


# ----------------------------- parameter init -------------------------------

def init_params(key, cin=4, cout=8, h=16, w=16, num_classes=10, n_clients=2):
    keys = jax.random.split(key, 2 * n_clients + 2)
    client_params = []
    for ci in range(n_clients):
        client_params.append({
            "conv_w": 0.1 * jax.random.normal(keys[2 * ci], (3, 3, cin, cout), jnp.float32),
            "conv_b": 0.1 * jax.random.normal(keys[2 * ci + 1], (cout,), jnp.float32),
        })
    feat_dim = (h // 2) * (w // 2) * cout
    fc_w = 0.05 * jax.random.normal(keys[-2], (feat_dim, num_classes), jnp.float32)
    fc_b = 0.05 * jax.random.normal(keys[-1], (num_classes,), jnp.float32)
    npad = max(LANES, ((num_classes + LANES - 1) // LANES) * LANES)
    server_params = {
        "fc_w": fc_w,
        "fc_b": fc_b,
        # lane-padded copies used by the Pallas linear head (padded once here, not per
        # forward); logits come out 128-lane dense and are sliced back in the wrapper.
        "fc_w_pad": jnp.zeros((feat_dim, npad), jnp.float32).at[:, :num_classes].set(fc_w),
        "fc_b_pad": jnp.zeros((1, npad), jnp.float32).at[:, :num_classes].set(fc_b),
    }
    return client_params, server_params


# ----------------------------- plain-JAX reference ---------------------------

def _reference_forward(client_params, server_params, x_nchw, i=0):
    p = client_params[i]
    x = jnp.transpose(x_nchw, (0, 2, 3, 1)).astype(jnp.float32)
    y = jax.lax.conv_general_dilated(x, p["conv_w"], window_strides=(1, 1),
                                     padding="SAME",
                                     dimension_numbers=("NHWC", "HWIO", "NHWC"))
    y = jnp.maximum(y + p["conv_b"], 0.0)
    pooled = jax.lax.reduce_window(y, -jnp.inf, jax.lax.max,
                                   (1, 2, 2, 1), (1, 2, 2, 1), "VALID")
    emb = jnp.mean(pooled, axis=(1, 2))
    logits = pooled.reshape(x.shape[0], -1) @ server_params["fc_w"] + server_params["fc_b"]
    return pooled, emb, logits


# ----------------------------- main ------------------------------------------

if __name__ == "__main__":
    key = jax.random.PRNGKey(0)
    pkey, xkey = jax.random.split(key)
    client_params, server_params = init_params(pkey, cin=4, cout=8, h=16, w=16,
                                               num_classes=10, n_clients=2)
    # NCHW input, same convention as the PyTorch module
    x = jax.random.normal(xkey, (2, 4, 16, 16), jnp.float32)

    output, to_server, output_final, flops, client_flops, cost = splitnn_forward(
        client_params, server_params, x, i=0, out=True, flops=0, interrupt=False)
    jax.block_until_ready((output, to_server, output_final))

    assert output.shape == (2, 8)            # client embedding
    assert to_server.shape == (2, 8, 8, 8)   # NHWC cut-layer activation
    assert output_final.shape == (2, 10)     # server logits
    assert output_final.dtype == jnp.float32

    # numerical check against a plain-JAX reference of the same split model
    ref_pooled, ref_emb, ref_logits = _reference_forward(
        client_params, server_params, x, i=0)
    np.testing.assert_allclose(np.asarray(to_server), np.asarray(ref_pooled),
                               rtol=1e-3, atol=1e-3)
    np.testing.assert_allclose(np.asarray(output), np.asarray(ref_emb),
                               rtol=1e-3, atol=1e-3)
    np.testing.assert_allclose(np.asarray(output_final), np.asarray(ref_logits),
                               rtol=1e-3, atol=1e-3)

    print("KERNEL_OK")
</pallas_src>

<mosaic_0001>
module attributes {stable_mosaic.version = 11 : i64} {
  func.func @_client_fused_kernel(%arg0: i32, %arg1: memref<1x256x36xf32, #tpu.memory_space<vmem>>, %arg2: memref<36x8xf32, #tpu.memory_space<vmem>>, %arg3: memref<1x8xf32, #tpu.memory_space<vmem>>, %arg4: memref<8x128xf32, #tpu.memory_space<vmem>>, %arg5: memref<1x64x8xf32, #tpu.memory_space<vmem>>, %arg6: memref<1x1x128xf32, #tpu.memory_space<vmem>>) attributes {dimension_semantics = [#tpu.dimension_semantics<parallel>], iteration_bounds = array<i64: 2>, scalar_prefetch = 0 : i64, scratch_operands = 0 : i64, tpu.core_type = #tpu.core_type<tc>, window_params = [{transform_indices = @transform_0, window_bounds = array<i64: 1, 256, 36>}, {pipeline_mode = #tpu.pipeline_mode<synchronous>, transform_indices = @transform_1, window_bounds = array<i64: 36, 8>}, {pipeline_mode = #tpu.pipeline_mode<synchronous>, transform_indices = @transform_2, window_bounds = array<i64: 1, 8>}, {pipeline_mode = #tpu.pipeline_mode<synchronous>, transform_indices = @transform_3, window_bounds = array<i64: 8, 128>}, {transform_indices = @transform_4, window_bounds = array<i64: 1, 64, 8>}, {transform_indices = @transform_5, window_bounds = array<i64: 1, 1, 128>}]} {
    %c0 = arith.constant 0 : index
    %c0_0 = arith.constant 0 : index
    %c0_1 = arith.constant 0 : index
    %0 = vector.load %arg1[%c0, %c0_0, %c0_1] : memref<1x256x36xf32, #tpu.memory_space<vmem>>, vector<1x256x36xf32>
    %1 = vector.shape_cast %0 : vector<1x256x36xf32> to vector<256x36xf32>
    %c0_2 = arith.constant 0 : index
    %c0_3 = arith.constant 0 : index
    %2 = vector.load %arg2[%c0_2, %c0_3] : memref<36x8xf32, #tpu.memory_space<vmem>>, vector<36x8xf32>
    %cst = arith.constant dense<0.000000e+00> : vector<256x8xf32>
    %3 = tpu.matmul %1, %2, %cst {dimension_numbers = #tpu.dot_dimension_numbers<[1], [0], [0], [1], [0, 0, 1, 1], [], []>} : vector<256x36xf32>, vector<36x8xf32>, vector<256x8xf32> -> vector<256x8xf32>
    %c0_4 = arith.constant 0 : index
    %c0_5 = arith.constant 0 : index
    %4 = vector.load %arg3[%c0_4, %c0_5] : memref<1x8xf32, #tpu.memory_space<vmem>>, vector<1x8xf32>
    %5 = vector.broadcast %4 : vector<1x8xf32> to vector<256x8xf32>
    %6 = arith.addf %3, %5 : vector<256x8xf32>
    %cst_6 = arith.constant 0.000000e+00 : f32
    %7 = vector.broadcast %cst_6 : f32 to vector<256x8xf32>
    %8 = arith.maximumf %6, %7 : vector<256x8xf32>
    %9 = vector.extract_strided_slice %8 {offsets = [0, 0], sizes = [64, 8], strides = [1, 1]} : vector<256x8xf32> to vector<64x8xf32>
    %10 = vector.extract_strided_slice %8 {offsets = [64, 0], sizes = [64, 8], strides = [1, 1]} : vector<256x8xf32> to vector<64x8xf32>
    %11 = arith.maximumf %9, %10 : vector<64x8xf32>
    %12 = vector.extract_strided_slice %8 {offsets = [128, 0], sizes = [64, 8], strides = [1, 1]} : vector<256x8xf32> to vector<64x8xf32>
    %13 = vector.extract_strided_slice %8 {offsets = [192, 0], sizes = [64, 8], strides = [1, 1]} : vector<256x8xf32> to vector<64x8xf32>
    %14 = arith.maximumf %12, %13 : vector<64x8xf32>
    %15 = arith.maximumf %11, %14 : vector<64x8xf32>
    %c0_7 = arith.constant 0 : index
    %c0_8 = arith.constant 0 : index
    %c0_9 = arith.constant 0 : index
    %16 = vector.load %arg5[%c0_7, %c0_8, %c0_9] : memref<1x64x8xf32, #tpu.memory_space<vmem>>, vector<1x64x8xf32>
    %17 = vector.shape_cast %16 : vector<1x64x8xf32> to vector<64x8xf32>
    %18 = vector.shape_cast %15 : vector<64x8xf32> to vector<1x64x8xf32>
    tpu.vector_store %arg5[%c0_7, %c0_8, %c0_9], %18 {strides = array<i32>} : memref<1x64x8xf32, #tpu.memory_space<vmem>>, vector<1x64x8xf32>,
    %c0_10 = arith.constant 0 : index
    %c0_11 = arith.constant 0 : index
    %19 = vector.load %arg4[%c0_10, %c0_11] : memref<8x128xf32, #tpu.memory_space<vmem>>, vector<8x128xf32>
    %cst_12 = arith.constant dense<0.000000e+00> : vector<64x128xf32>
    %20 = tpu.matmul %15, %19, %cst_12 {dimension_numbers = #tpu.dot_dimension_numbers<[1], [0], [0], [1], [0, 0, 1, 1], [], []>} : vector<64x8xf32>, vector<8x128xf32>, vector<64x128xf32> -> vector<64x128xf32>
    %cst_13 = arith.constant dense<0.000000e+00> : vector<128xf32>
    %21 = vector.multi_reduction <add>, %20, %cst_13 [0] : vector<64x128xf32> to vector<128xf32>
    %22 = vector.shape_cast %21 : vector<128xf32> to vector<1x128xf32>
    %c0_14 = arith.constant 0 : index
    %c0_15 = arith.constant 0 : index
    %c0_16 = arith.constant 0 : index
    %23 = vector.load %arg6[%c0_14, %c0_15, %c0_16] : memref<1x1x128xf32, #tpu.memory_space<vmem>>, vector<1x1x128xf32>
    %24 = vector.shape_cast %23 : vector<1x1x128xf32> to vector<1x128xf32>
    %25 = vector.shape_cast %22 : vector<1x128xf32> to vector<1x1x128xf32>
    tpu.vector_store %arg6[%c0_14, %c0_15, %c0_16], %25 {strides = array<i32>} : memref<1x1x128xf32, #tpu.memory_space<vmem>>, vector<1x1x128xf32>,
    return
  }
  func.func @transform_0(%arg0: i32) -> (i32, i32, i32) {
    %c0_i32 = arith.constant 0 : i32
    %c0_i32_0 = arith.constant 0 : i32
    %c0_i32_1 = arith.constant 0 : i32
    return %arg0, %c0_i32, %c0_i32_0 : i32, i32, i32
  }
  func.func @transform_1(%arg0: i32) -> (i32, i32) {
    %c0_i32 = arith.constant 0 : i32
    %c0_i32_0 = arith.constant 0 : i32
    %c0_i32_1 = arith.constant 0 : i32
    return %c0_i32, %c0_i32_0 : i32, i32
  }
  func.func @transform_2(%arg0: i32) -> (i32, i32) {
    %c0_i32 = arith.constant 0 : i32
    %c0_i32_0 = arith.constant 0 : i32
    %c0_i32_1 = arith.constant 0 : i32
    return %c0_i32, %c0_i32_0 : i32, i32
  }
  func.func @transform_3(%arg0: i32) -> (i32, i32) {
    %c0_i32 = arith.constant 0 : i32
    %c0_i32_0 = arith.constant 0 : i32
    %c0_i32_1 = arith.constant 0 : i32
    return %c0_i32, %c0_i32_0 : i32, i32
  }
  func.func @transform_4(%arg0: i32) -> (i32, i32, i32) {
    %c0_i32 = arith.constant 0 : i32
    %c0_i32_0 = arith.constant 0 : i32
    %c0_i32_1 = arith.constant 0 : i32
    return %arg0, %c0_i32, %c0_i32_0 : i32, i32, i32
  }
  func.func @transform_5(%arg0: i32) -> (i32, i32, i32) {
    %c0_i32 = arith.constant 0 : i32
    %c0_i32_0 = arith.constant 0 : i32
    %c0_i32_1 = arith.constant 0 : i32
    return %arg0, %c0_i32, %c0_i32_0 : i32, i32, i32
  }
}

module attributes {stable_mosaic.version = 11 : i64} {
  func.func @_linear_kernel(%arg0: i32, %arg1: memref<2x512xf32, #tpu.memory_space<vmem>>, %arg2: memref<512x128xf32, #tpu.memory_space<vmem>>, %arg3: memref<1x128xf32, #tpu.memory_space<vmem>>, %arg4: memref<2x128xf32, #tpu.memory_space<vmem>>) attributes {dimension_semantics = [#tpu.dimension_semantics<arbitrary>], iteration_bounds = array<i64: 1>, scalar_prefetch = 0 : i64, scratch_operands = 0 : i64, tpu.core_type = #tpu.core_type<tc>, window_params = [{pipeline_mode = #tpu.pipeline_mode<synchronous>, transform_indices = @transform_0, window_bounds = array<i64: 2, 512>}, {pipeline_mode = #tpu.pipeline_mode<synchronous>, transform_indices = @transform_1, window_bounds = array<i64: 512, 128>}, {pipeline_mode = #tpu.pipeline_mode<synchronous>, transform_indices = @transform_2, window_bounds = array<i64: 1, 128>}, {pipeline_mode = #tpu.pipeline_mode<synchronous>, transform_indices = @transform_3, window_bounds = array<i64: 2, 128>}]} {
    %c0 = arith.constant 0 : index
    %c0_0 = arith.constant 0 : index
    %0 = vector.load %arg1[%c0, %c0_0] : memref<2x512xf32, #tpu.memory_space<vmem>>, vector<2x512xf32>
    %c0_1 = arith.constant 0 : index
    %c0_2 = arith.constant 0 : index
    %1 = vector.load %arg2[%c0_1, %c0_2] : memref<512x128xf32, #tpu.memory_space<vmem>>, vector<512x128xf32>
    %cst = arith.constant dense<0.000000e+00> : vector<2x128xf32>
    %2 = tpu.matmul %0, %1, %cst {dimension_numbers = #tpu.dot_dimension_numbers<[1], [0], [0], [1], [0, 0, 1, 1], [], []>} : vector<2x512xf32>, vector<512x128xf32>, vector<2x128xf32> -> vector<2x128xf32>
    %c0_3 = arith.constant 0 : index
    %c0_4 = arith.constant 0 : index
    %3 = vector.load %arg3[%c0_3, %c0_4] : memref<1x128xf32, #tpu.memory_space<vmem>>, vector<1x128xf32>
    %4 = vector.broadcast %3 : vector<1x128xf32> to vector<2x128xf32>
    %5 = arith.addf %2, %4 : vector<2x128xf32>
    %c0_5 = arith.constant 0 : index
    %c0_6 = arith.constant 0 : index
    %6 = vector.load %arg4[%c0_5, %c0_6] : memref<2x128xf32, #tpu.memory_space<vmem>>, vector<2x128xf32>
    tpu.vector_store %arg4[%c0_5, %c0_6], %5 {strides = array<i32>} : memref<2x128xf32, #tpu.memory_space<vmem>>, vector<2x128xf32>,
    return
  }
  func.func @transform_0(%arg0: i32) -> (i32, i32) {
    %c0_i32 = arith.constant 0 : i32
    %c0_i32_0 = arith.constant 0 : i32
    %c0_i32_1 = arith.constant 0 : i32
    return %c0_i32, %c0_i32_0 : i32, i32
  }
  func.func @transform_1(%arg0: i32) -> (i32, i32) {
    %c0_i32 = arith.constant 0 : i32
    %c0_i32_0 = arith.constant 0 : i32
    %c0_i32_1 = arith.constant 0 : i32
    return %c0_i32, %c0_i32_0 : i32, i32
  }
  func.func @transform_2(%arg0: i32) -> (i32, i32) {
    %c0_i32 = arith.constant 0 : i32
    %c0_i32_0 = arith.constant 0 : i32
    %c0_i32_1 = arith.constant 0 : i32
    return %c0_i32, %c0_i32_0 : i32, i32
  }
  func.func @transform_3(%arg0: i32) -> (i32, i32) {
    %c0_i32 = arith.constant 0 : i32
    %c0_i32_0 = arith.constant 0 : i32
    %c0_i32_1 = arith.constant 0 : i32
    return %c0_i32, %c0_i32_0 : i32, i32
  }
}

</mosaic_0001>

<bundles_post_ra>
// kernel: splitnn_forward.3
= control target key start
LH: loop header
LB: loop body
LE: loop exit
PB: predicated region body
PF: predicated region fallthrough
CT: control target
= control target key end

     0   :  { %v426_v47 = vmov 1983009808   ;;  %v92_v49 = vlaneseq  ;;  %s658_s0 = inlined_call_operand.vmem [shape: f32[2,512], index: 0, kind: input, shape index: {}]   ;;  %s659_s1 = inlined_call_operand.vmem [shape: f32[512,128], index: 1, kind: input, shape index: {}]   ;;  %s660_s2 = inlined_call_operand.vmem [shape: f32[1,128], index: 2, kind: input, shape index: {}]   ;;  %s661_s3 = inlined_call_operand.hbm [shape: f32[2,128], index: 3, kind: output, shape index: {}]  }
   0x1   :  { %v32_v0 = vld [vmem:[%s659_s1 + $0x80] sm:$0xff]  ;;  %v33_v1 = vld [vmem:[%s659_s1 + $0x88] sm:$0xff]  ;;  %v34_v11 = vld [vmem:[%s659_s1 + $0x90] sm:$0xff]  ;;  %v90_v48 = vunpack.c.l.s4 %v426_v47 }
   0x2   :  { %v16_v2 = vld [vmem:[%s659_s1] sm:$0xff]  ;;  %v335_v3 = vpack.c.bf16 %v33_v1, %v32_v0  ;;  %v17_v4 = vld [vmem:[%s659_s1 + $0x8] sm:$0xff]  ;;  %v35_v13 = vld [vmem:[%s659_s1 + $0x98] sm:$0xff]  ;;  %v93_v0 = vshrl.u32 %v92_v49, 7 }
   0x3   :  { %v64_v5 = vld [vmem:[%s659_s1 + $0x180] sm:$0xff]  ;;  %v65_v6 = vld [vmem:[%s659_s1 + $0x188] sm:$0xff]  ;;  %v337_v7 = vpack.c.bf16 %v17_v4, %v16_v2  ;;  %v18_v14 = vld [vmem:[%s659_s1 + $0x10] sm:$0xff]  ;;  %v339_v16 = vpack.c.bf16 %v35_v13, %v34_v11  ;;  %v91_v63 = vunpack.c.0.s8 %v90_v48 }
   0x4   :  { %v367_v8 = vpack.c.bf16 %v65_v6, %v64_v5  ;;  %v48_v9 = vld [vmem:[%s659_s1 + $0x100] sm:$0xff]  ;;  %v49_v10 = vld [vmem:[%s659_s1 + $0x108] sm:$0xff]  ;;  %336 = vmatprep.subr.bf16.mxu0 %v335_v3  ;;  %v19_v15 = vld [vmem:[%s659_s1 + $0x18] sm:$0xff] }
   0x5   :  { %v369_v12 = vpack.c.bf16 %v49_v10, %v48_v9  ;;  %338 = vmatpush3.bf16.msra.mxu0 %v337_v7  ;;  %v341_v17 = vpack.c.bf16 %v19_v15, %v18_v14  ;;  %v66_v18 = vld [vmem:[%s659_s1 + $0x190] sm:$0xff]  ;;  %v67_v19 = vld [vmem:[%s659_s1 + $0x198] sm:$0xff]  ;;  %v36_v23 = vld [vmem:[%s659_s1 + $0xa0] sm:$0xff]  ;;  %v94_v13 = vsub.s32 %v91_v63, %v93_v0 }
   0x6   :  { %368 = vmatprep.subr.bf16.mxu1 %v367_v8  ;;  %v50_v20 = vld [vmem:[%s659_s1 + $0x110] sm:$0xff]  ;;  %v371_v21 = vpack.c.bf16 %v67_v19, %v66_v18  ;;  %v51_v22 = vld [vmem:[%s659_s1 + $0x118] sm:$0xff]  ;;  %v37_v24 = vld [vmem:[%s659_s1 + $0xa8] sm:$0xff]  ;;  %340 = vmatprep.subr.bf16.mxu0 %v339_v16 }
   0x7   :  { %370 = vmatpush3.bf16.msra.mxu1 %v369_v12  ;;  %v373_v25 = vpack.c.bf16 %v51_v22, %v50_v20  ;;  %v343_v26 = vpack.c.bf16 %v37_v24, %v36_v23  ;;  %v20_v27 = vld [vmem:[%s659_s1 + $0x20] sm:$0xff]  ;;  %v21_v28 = vld [vmem:[%s659_s1 + $0x28] sm:$0xff]  ;;  %v38_v35 = vld [vmem:[%s659_s1 + $0xb0] sm:$0xff] }
   0x8   :  { %v68_v29 = vld [vmem:[%s659_s1 + $0x1a0] sm:$0xff]  ;;  %372 = vmatprep.subr.bf16.mxu1 %v371_v21  ;;  %v69_v30 = vld [vmem:[%s659_s1 + $0x1a8] sm:$0xff]  ;;  %v345_v33 = vpack.c.bf16 %v21_v28, %v20_v27  ;;  %v39_v36 = vld [vmem:[%s659_s1 + $0xb8] sm:$0xff] }
   0x9   :  { %v52_v31 = vld [vmem:[%s659_s1 + $0x120] sm:$0xff]  ;;  %v53_v32 = vld [vmem:[%s659_s1 + $0x128] sm:$0xff]  ;;  %342 = vmatpush3.bf16.msra.mxu0 %v341_v17  ;;  %v375_v34 = vpack.c.bf16 %v69_v30, %v68_v29  ;;  %v22_v37 = vld [vmem:[%s659_s1 + $0x30] sm:$0xff]  ;;  %v347_v39 = vpack.c.bf16 %v39_v36, %v38_v35 }
   0xa   :  { %344 = vmatprep.subr.bf16.mxu0 %v343_v26  ;;  %v377_v38 = vpack.c.bf16 %v53_v32, %v52_v31  ;;  %v23_v40 = vld [vmem:[%s659_s1 + $0x38] sm:$0xff]  ;;  %v70_v41 = vld [vmem:[%s659_s1 + $0x1b0] sm:$0xff]  ;;  %v40_v46 = vld [vmem:[%s659_s1 + $0xc0] sm:$0xff] }
   0xb   :  { %374 = vmatpush3.bf16.msra.mxu1 %v373_v25  ;;  %v71_v42 = vld [vmem:[%s659_s1 + $0x1b8] sm:$0xff]  ;;  %v54_v44 = vld [vmem:[%s659_s1 + $0x130] sm:$0xff]  ;;  %v41_v50 = vld [vmem:[%s659_s1 + $0xc8] sm:$0xff]  ;;  %v349_v51 = vpack.c.bf16 %v23_v40, %v22_v37 }
   0xc   :  { %376 = vmatprep.subr.bf16.mxu1 %v375_v34  ;;  %v379_v43 = vpack.c.bf16 %v71_v42, %v70_v41  ;;  %v55_v45 = vld [vmem:[%s659_s1 + $0x138] sm:$0xff]  ;;  %v72_v52 = vld [vmem:[%s659_s1 + $0x1c0] sm:$0xff]  ;;  %v73_v53 = vld [vmem:[%s659_s1 + $0x1c8] sm:$0xff]  ;;  %v351_v55 = vpack.c.bf16 %v41_v50, %v40_v46 }
   0xd   :  { %346 = vmatpush3.bf16.msra.mxu0 %v345_v33  ;;  %v381_v54 = vpack.c.bf16 %v55_v45, %v54_v44  ;;  %v24_v56 = vld [vmem:[%s659_s1 + $0x40] sm:$0xff]  ;;  %v25_v57 = vld [vmem:[%s659_s1 + $0x48] sm:$0xff]  ;;  %v383_v59 = vpack.c.bf16 %v73_v53, %v72_v52  ;;  %v42_v61 = vld [vmem:[%s659_s1 + $0xd0] sm:$0xff] }
   0xe   :  { %348 = vmatprep.subr.bf16.mxu0 %v347_v39  ;;  %v56_v58 = vld [vmem:[%s659_s1 + $0x140] sm:$0xff]  ;;  %v57_v60 = vld [vmem:[%s659_s1 + $0x148] sm:$0xff]  ;;  %v43_v62 = vld [vmem:[%s659_s1 + $0xd8] sm:$0xff]  ;;  %v353_v3 = vpack.c.bf16 %v25_v57, %v24_v56 }
   0xf   :  { %378 = vmatpush3.bf16.msra.mxu1 %v377_v38  ;;  %v74_v1 = vld [vmem:[%s659_s1 + $0x1d0] sm:$0xff]  ;;  %v75_v2 = vld [vmem:[%s659_s1 + $0x1d8] sm:$0xff]  ;;  %v385_v4 = vpack.c.bf16 %v57_v60, %v56_v58  ;;  %v355_v5 = vpack.c.bf16 %v43_v62, %v42_v61  ;;  %v44_v11 = vld [vmem:[%s659_s1 + $0xe0] sm:$0xff] }
  0x10   :  { %380 = vmatprep.subr.bf16.mxu1 %v379_v43  ;;  %v26_v6 = vld [vmem:[%s659_s1 + $0x50] sm:$0xff]  ;;  %v27_v7 = vld [vmem:[%s659_s1 + $0x58] sm:$0xff]  ;;  %v387_v9 = vpack.c.bf16 %v75_v2, %v74_v1  ;;  %v45_v12 = vld [vmem:[%s659_s1 + $0xe8] sm:$0xff] }
  0x11   :  { %350 = vmatpush3.bf16.msra.mxu0 %v349_v51  ;;  %v58_v8 = vld [vmem:[%s659_s1 + $0x150] sm:$0xff]  ;;  %v59_v10 = vld [vmem:[%s659_s1 + $0x158] sm:$0xff]  ;;  %v76_v14 = vld [vmem:[%s659_s1 + $0x1e0] sm:$0xff]  ;;  %v357_v16 = vpack.c.bf16 %v27_v7, %v26_v6  ;;  %v359_v20 = vpack.c.bf16 %v45_v12, %v44_v11 }
  0x12   :  { %352 = vmatprep.subr.bf16.mxu0 %v351_v55  ;;  %v77_v15 = vld [vmem:[%s659_s1 + $0x1e8] sm:$0xff]  ;;  %v28_v17 = vld [vmem:[%s659_s1 + $0x60] sm:$0xff]  ;;  %v389_v19 = vpack.c.bf16 %v59_v10, %v58_v8 }
  0x13   :  { %382 = vmatpush3.bf16.msra.mxu1 %v381_v54  ;;  %v29_v18 = vld [vmem:[%s659_s1 + $0x68] sm:$0xff]  ;;  %v60_v21 = vld [vmem:[%s659_s1 + $0x160] sm:$0xff] }
  0x14   :  { %384 = vmatprep.subr.bf16.mxu1 %v383_v59  ;;  %v15_v22 = vld [vmem:[%s658_s0] sm:$0xff] }
  0x15   :  { %354 = vmatpush3.bf16.msra.mxu0 %v353_v3 }
  0x16   :  { %356 = vmatprep.subr.bf16.mxu0 %v355_v5 }
  0x17   :  { %386 = vmatpush3.bf16.msra.mxu1 %v385_v4 }
  0x18   :  { %8 = vsyncpa [#allocation3], 0  ;;  %388 = vmatprep.subr.bf16.mxu1 %v387_v9  ;;  %v391_v23 = vpack.c.bf16 %v77_v15, %v76_v14  ;;  %v61_v24 = vld [vmem:[%s659_s1 + $0x168] sm:$0xff]  ;;  %v46_v25 = vld [vmem:[%s659_s1 + $0xf0] sm:$0xff]  ;;  %v95_v27 = vrot.slane %v15_v22, %v94_v13  ;;  %v88_v28 = vcombine.high %v15_v22, %v15_v22  ;;  %v361_v31 = vpack.c.bf16 %v29_v18, %v28_v17 }
  0x19   :  { %v47_v26 = vld [vmem:[%s659_s1 + $0xf8] sm:$0xff]  ;;  %v78_v29 = vld [vmem:[%s659_s1 + $0x1f0] sm:$0xff]  ;;  %358 = vmatpush3.bf16.msra.mxu0 %v357_v16  ;;  %v393_v34 = vpack.c.bf16 %v61_v24, %v60_v21  ;;  %v264_v45 = vld [vmem:[%s660_s2] ss:$0 sm:$0xff] }
  0x1a   :  { %v79_v30 = vld [vmem:[%s659_s1 + $0x1f8] sm:$0xff]  ;;  %v103_v32 = vcombine.high %v95_v27, %v95_v27  ;;  %v102_v33 = vrot.slane %v88_v28, %v94_v13  ;;  %360 = vmatprep.subr.bf16.mxu0 %v359_v20  ;;  %v363_v35 = vpack.c.bf16 %v47_v26, %v46_v25  ;;  %v30_v36 = vld [vmem:[%s659_s1 + $0x70] sm:$0xff] }
  0x1b   :  { %390 = vmatpush3.bf16.msra.mxu1 %v389_v19  ;;  %v31_v37 = vld [vmem:[%s659_s1 + $0x78] sm:$0xff]  ;;  %v395_v38 = vpack.c.bf16 %v79_v30, %v78_v29  ;;  %v62_v39 = vld [vmem:[%s659_s1 + $0x170] sm:$0xff] }
  0x1c   :  { %392 = vmatprep.subr.bf16.mxu1 %v391_v23  ;;  %v63_v40 = vld [vmem:[%s659_s1 + $0x178] sm:$0xff]  ;;  %173 = vmatprep.mubr.f32.mxu0 %v103_v32  ;;  %v104_v41 = vcombine.high %v102_v33, %v102_v33  ;;  %v365_v42 = vpack.c.bf16 %v31_v37, %v30_v36  ;;  %s427_s1 = smov [#allocation2]  }
  0x1d   :  { %362 = vmatpush3.bf16.msra.mxu0 %v361_v31  ;;  %v397_v43 = vpack.c.bf16 %v63_v40, %v62_v39  ;;  %s256_s8 = sshll.u32 %s427_s1, 4  ;;  %s257_s8 = int_to_ptr.vmem [resolvable:$true] %s256_s8 }
  0x1e   :  { %243 = vmatprep.mubr.f32.mxu1 %v104_v41  ;;  %364 = vmatprep.subr.bf16.mxu0 %v363_v35  ;;  %s402_s9 = scalar_lea.vmem %s257_s8, 32  ;;  %p407_p1 = scmp.lt.s32.totalorder %s257_s8, %s257_s8 }
  0x1f   :  { %394 = vmatpush3.bf16.msra.mxu1 %v393_v34  ;;  %p403_p0 = scmp.ne.s32.totalorder %s257_s8, %s402_s9  ;;  %p408_p2 = scmp.lt.s32.totalorder %s402_s9, %s402_s9 }
  0x20   :  { %396 = vmatprep.subr.bf16.mxu1 %v395_v38 }
  0x21   :  { %366 = vmatpush3.bf16.msra.mxu0 %v365_v42  ;;  %p409_p3 = por %p408_p2, %p407_p1 }
  0x23   :  { %398 = vmatpush3.bf16.msra.mxu1 %v397_v43  ;;  %p410_p4 = pnand %p409_p3, %p403_p0 }
  0x24   :  { %174 = vmatmul.mubr.f32.vlgmr.msra.gmra.mrb[0].mxu0 %v95_v27 }
  0x26   :  { %244 = vmatmul.mubr.f32.vlgmr.msra.gmra.mrb[0].mxu1 %v102_v33 }
  0xf7   :  { %v297_v44 = vpop.f32.mrb[0].mxu0 }
  0xf8   :  { %v298_v46 = vpop.f32.mrb[1].mxu0 }
  0xf9   :  { %v332_v47 = vpop.f32.mrb[0].mxu1  ;;  %v299_v48 = vadd.f32 %v298_v46, %v297_v44 }
  0xfa   :  { %v333_v49 = vpop.f32.mrb[1].mxu1 }
  0xfb   :  { %v334_v50 = vadd.f32 %v333_v49, %v332_v47  ;;  %v176_v51 = vadd.f32 %v299_v48, %v264_v45 }
  0xfd   :  { %v246_v52 = vadd.f32 %v334_v50, %v176_v51 }
  0xff   :  { %249 = vst [vmem:[#allocation2] sm:$0x3] %v246_v52 }
 0x100   :  { %413 = shalt.err (!%p410_p4)
}
 0x101   :  { %s414_s11 = scalar_lea.hbm %s661_s3, 32 }
 0x102   :  { %p415_p5 = scmp.ne.s32.totalorder %s661_s3, %s414_s11  ;;  %p418_p6 = scmp.lt.u32.totalorder %s414_s11, %s661_s3 }
 0x104   :  { %p420_p7 = pnand %p418_p6, %p415_p5 }
 0x106   :  { %423 = shalt.err (!%p420_p7)
}
 0x107   :  { %259 = dma.vmem_to_hbm [thread:$0]  %s257_s8, 32, %s661_s3, [#allocation3]  }
 0x108   :  { %424 = dma.done.wait [#allocation3], 32  }
 0x109   :  { %425 = vsyncadd [#allocation3], 4294967264 }
 0x10a   :  { %263 = vsyncpa [#allocation3], 1 }

// kernel: splitnn_forward.2
= control target key start
LH: loop header
LB: loop body
LE: loop exit
PB: predicated region body
PF: predicated region fallthrough
CT: control target
= control target key end

     0   :  { %11 = vsyncpa [#allocation3], 0  ;;  %s1514_s0 = inlined_call_operand.vmem [shape: f32[2,256,36], index: 0, kind: input, shape index: {}]   ;;  %s1515_s1 = inlined_call_operand.vmem [shape: f32[36,8], index: 1, kind: input, shape index: {}]   ;;  %s1516_s2 = inlined_call_operand.vmem [shape: f32[1,8], index: 2, kind: input, shape index: {}]   ;;  %s1517_s3 = inlined_call_operand.vmem [shape: f32[8,128], index: 3, kind: input, shape index: {}]   ;;  %s1518_s4 = inlined_call_operand.vmem [shape: f32[2,64,8], index: 4, kind: output, shape index: {0}]   ;;  %s1519_s5 = inlined_call_operand.hbm [shape: f32[2,1,128], index: 5, kind: output, shape index: {1}]  }
   0x1   :  { %13 = vsyncpa [#allocation3 + $0x1], 0  ;;  %s1236_s18 = smov 0   ;;  %s1238_s19 = smov 0  }
   0x2   :  { %s1240_s20 = smov 0   ;;  %s1242_s21 = smov 0  }
   0x3 LB: > { %s1257_s22 = sadd.s32 4294967295, %s1203_s21   ;;  %s915_s23 = sadd.s32 4294967294, %s1203_s21   ;;  %s1203_s21 = sphi %s1242_s21, %s1525_s21   ;;  %s1199_s20 = sphi %s1240_s20, %s1524_s20   ;;  %s1195_s19 = sphi %s1238_s19, %s1523_s19   ;;  %s1191_s18 = sphi %s1236_s18, %s1522_s18  }
   0x4   : > { %s1261_s24 = sadd.s32 1, %s1203_s21   ;;  %s141_s25 = sadd.s32 1, %s1199_s20 }
   0x5   : > { %s138_s26 = ssub.s32 %s1203_s21, %s1261_s24  ;;  %p151_p0 = scmp.ne.s32.totalorder %s1199_s20, %s1195_s19 }
   0x6   : > { %p139_p1 = scmp.eq.s32.totalorder %s138_s26, 0  ;;  %p152_p2 = scmp.eq.s32.totalorder %s1257_s22, 1 }
   0x7   : > { %p157_p3 = scmp.ne.s32.totalorder %s1195_s19, %s1191_s18  ;;  %p158_p4 = scmp.eq.s32.totalorder %s915_s23, 1 }
   0x8   : > { %s1272_s27 = scalar_select %p139_p1, %s1199_s20, %s141_s25  }
   0x9   : > { %p1274_p5 = por %p152_p2, %p151_p0  ;;  %p1278_p6 = por %p158_p4, %p157_p3 }
   0xa   : > { %p918_p7 = scmp.ge.s32.totalorder %s1203_s21, 1  ;;  %p193_p8 = scmp.lt.s32.totalorder %s1203_s21, 3 }
   0xc   : > { %p194_p9 = pnand %p918_p7, %p193_p8 }
   0xd   : > { %v267_v0 = vld [vmem:[%s1515_s1] sm:$0xff] (!%p194_p9)  ;;  %v268_v1 = vld [vmem:[%s1515_s1 + $0x8] sm:$0xff] (!%p194_p9)  ;;  %v269_v2 = vld [vmem:[%s1515_s1 + $0x10] sm:$0xff] (!%p194_p9)  ;;  %p225_p10 = scmp.lt.s32.totalorder (!%p194_p9), %s1257_s22, 1  ;;  %vm279_vm0 = vcmask (!%p194_p9), 293888   ;;  %vm376_vm1 = vcmask (!%p194_p9), 1043456  }
   0xe   : > { %197 = sbr.rel (%p194_p9) target bundleno = 536 (0x218), region = 36  ;;  %v1088_v3 = vpack.c.bf16 (!%p194_p9), %v268_v1, %v267_v0  ;;  %v270_v4 = vld [vmem:[%s1515_s1 + $0x18] sm:$0xff] (!%p194_p9)  ;;  %v271_v6 = vld [vmem:[%s1515_s1 + $0x20] sm:$0xf] (!%p194_p9)  ;;  %vm661_vm2 = vcmask (!%p194_p9), 64512   ;;  %s223_s12 = sand.u32 (!%p194_p9), 1, %s1195_s19  }
   0xf   : > { %v1092_v5 = vpack.c.bf16 (!%p194_p9), %v270_v4, %v269_v2  ;;  %v670_v39 = vld [vmem:[%s1517_s3] sm:$0xff] (!%p194_p9)  ;;  %s820_s25 = scalar_lea.sflag (!%p194_p9), [#allocation3], %s223_s12 }
  0x10   : > { %1089 = vmatprep.subr.bf16.mxu0 (!%p194_p9), %v1088_v3  ;;  %1096 = vmatprep.subr.bf16.mxu1 (!%p194_p9), %v1088_v3  ;;  %v1383_v52 = vld [vmem:[%s1516_s2] ss:$0 sm:$0xff] (!%p194_p9) }
  0x11   : > { %1091 = vmatpush3.bf16.msra.mxu0 (!%p194_p9), %v1088_v3  ;;  %1099 = vmatpush3.bf16.msra.mxu1 (!%p194_p9), %v1088_v3 }
  0x12   : > { %1093 = vmatprep.subr.bf16.mxu0 (!%p194_p9), %v1092_v5  ;;  %1097 = vmatprep.subr.bf16.mxu1 (!%p194_p9), %v1092_v5 }
  0x15   : > { %s1298_s13 = scalar_select %p225_p10, %s1257_s22, 1  ;;  %1095 = vmatpush3.bf16.msra.mxu0 %v1092_v5  ;;  %1100 = vmatpush3.bf16.msra.mxu1 %v1092_v5 }
  0x16   : > { %1024 = vmatprep.subr.msk.mxu0 %vm376_vm1, %v271_v6  ;;  %1098 = vmatprep.subr.msk.mxu1 %vm376_vm1, %v271_v6 }
  0x17   : > { %s968_s14 = sshll.u32 %s1298_s13, 8  ;;  %s969_s8 = sshll.u32 %s1298_s13, 6 }
  0x18   : > { %s1304_s17 = scalar_lea.vmem %s1514_s0, %s968_s14  ;;  %s1428_s11 = scalar_lea.vmem %s1518_s4, %s969_s8 }
  0x19   : > { %v235_v7 = vld [vmem:[%s1304_s17] sm:$0xff]  ;;  %v236_v9 = vld [vmem:[%s1304_s17 + $0x8] sm:$0xff]  ;;  %v237_v11 = vld [vmem:[%s1304_s17 + $0x10] sm:$0xff]  ;;  %1025 = vmatpush3.msk.msra.mxu0 %vm376_vm1, %v271_v6  ;;  %1101 = vmatpush3.msk.msra.mxu1 %vm376_vm1, %v271_v6  ;;  %s965_s13 = sshll.u32 %s1257_s22, 4  ;;  %s224_s14 = scalar_lea.vmem [#allocation2], %s223_s12 }
  0x1a   : > { %1026 = vmatprep.mubr.msk.f32.mxu0 %vm279_vm0, %v235_v7  ;;  %v255_v8 = vld [vmem:[%s1304_s17 + $0xa0] sm:$0xff]  ;;  %v256_v10 = vld [vmem:[%s1304_s17 + $0xa8] sm:$0xff]  ;;  %v257_v12 = vld [vmem:[%s1304_s17 + $0xb0] sm:$0xff]  ;;  %1074 = vmatprep.subr.mxu1 %v670_v39  ;;  %s835_s15 = sshll.u32 %s224_s14, 4  ;;  %s1472_s23 = scalar_lea.hbm %s1519_s5, %s965_s13  ;;  %s1474_s15 = int_to_ptr.vmem [resolvable:$true] %s835_s15 }
  0x1b   : > { %1056 = vmatprep.mubr.msk.f32.mxu1 %vm279_vm0, %v255_v8  ;;  %1027 = vmatmul.mubr.msk.f32.vlgmr.msra.gmra.mrb[0].mxu0 %vm279_vm0, %v236_v9  ;;  %v238_v13 = vld [vmem:[%s1304_s17 + $0x18] sm:$0xff]  ;;  %v239_v15 = vld [vmem:[%s1304_s17 + $0x20] sm:$0xff]  ;;  %v240_v17 = vld [vmem:[%s1304_s17 + $0x28] sm:$0xff]  ;;  %s1141_s26 = scalar_lea.vmem %s1474_s15, 16  ;;  %s1205_s22 = smov [#allocation2]  }
  0x1c   : > { %1057 = vmatmul.mubr.msk.f32.vlgmr.msra.gmra.mrb[0].mxu1 %vm279_vm0, %v256_v10  ;;  %1029 = vmatprep.mubr.msk.f32.mxu0 %vm279_vm0, %v237_v11  ;;  %v258_v14 = vld [vmem:[%s1304_s17 + $0xb8] sm:$0xff]  ;;  %v259_v16 = vld [vmem:[%s1304_s17 + $0xc0] sm:$0xff]  ;;  %v260_v18 = vld [vmem:[%s1304_s17 + $0xc8] sm:$0xff]  ;;  %p1142_p11 = scmp.ne.s32.totalorder %s1474_s15, %s1141_s26  ;;  %s1145_s30 = sshll.u32 %s1205_s22, 4  ;;  %s1146_s30 = int_to_ptr.vmem [resolvable:$false] %s1145_s30 }
  0x1d   : > { %1059 = vmatprep.mubr.msk.f32.mxu1 %vm279_vm0, %v257_v12  ;;  %v241_v19 = vld [vmem:[%s1304_s17 + $0x30] sm:$0xff]  ;;  %v242_v21 = vld [vmem:[%s1304_s17 + $0x38] sm:$0xff]  ;;  %v243_v23 = vld [vmem:[%s1304_s17 + $0x40] sm:$0xff]  ;;  %1075 = vmatpush3.msra.mxu1 %v670_v39  ;;  %s1147_s6 = scalar_lea.vmem %s1146_s30, 32  ;;  %p1148_p0 = scmp.lt.s32.totalorder %s1474_s15, %s1146_s30 }
  0x1e   : > { %v261_v20 = vld [vmem:[%s1304_s17 + $0xd0] sm:$0xff]  ;;  %v262_v22 = vld [vmem:[%s1304_s17 + $0xd8] sm:$0xff]  ;;  %v263_v24 = vld [vmem:[%s1304_s17 + $0xe0] sm:$0xff]  ;;  %p1143_p12 = pnand %p1142_p11, %p1274_p5  ;;  %p1149_p1 = scmp.lt.s32.totalorder %s1147_s6, %s1141_s26 }
  0x1f   : > { %1030 = vmatmul.mubr.msk.f32.gmra.mrb[2].mxu0 %vm279_vm0, %v238_v13  ;;  %v244_v25 = vld [vmem:[%s1304_s17 + $0x48] sm:$0xff]  ;;  %v245_v27 = vld [vmem:[%s1304_s17 + $0x50] sm:$0xff]  ;;  %v246_v29 = vld [vmem:[%s1304_s17 + $0x58] sm:$0xff] }
  0x20   : > { %1060 = vmatmul.mubr.msk.f32.gmra.mrb[2].mxu1 %vm279_vm0, %v258_v14  ;;  %1032 = vmatprep.mubr.msk.f32.mxu0 %vm279_vm0, %v239_v15  ;;  %v264_v26 = vld [vmem:[%s1304_s17 + $0xe8] sm:$0xff]  ;;  %v265_v28 = vld [vmem:[%s1304_s17 + $0xf0] sm:$0xff]  ;;  %v266_v30 = vld [vmem:[%s1304_s17 + $0xf8] sm:$0xff]  ;;  %p1144_p13 = pneg %p1143_p12  ;;  %p1150_p2 = por %p1149_p1, %p1148_p0 }
  0x21   : > { %1062 = vmatprep.mubr.msk.f32.mxu1 %vm279_vm0, %v259_v16  ;;  %v247_v31 = vld [vmem:[%s1304_s17 + $0x60] sm:$0xff]  ;;  %v248_v32 = vld [vmem:[%s1304_s17 + $0x68] sm:$0xff]  ;;  %v249_v33 = vld [vmem:[%s1304_s17 + $0x70] sm:$0xff] }
  0x22   : > { %v250_v34 = vld [vmem:[%s1304_s17 + $0x78] sm:$0xff]  ;;  %v251_v35 = vld [vmem:[%s1304_s17 + $0x80] sm:$0xff]  ;;  %v252_v36 = vld [vmem:[%s1304_s17 + $0x88] sm:$0xff]  ;;  %p1151_p3 = pnand %p1150_p2, %p1144_p13 }
  0x23   : > { %1033 = vmatmul.mubr.msk.f32.gmra.mrb[4].mxu0 %vm279_vm0, %v240_v17  ;;  %v253_v37 = vld [vmem:[%s1304_s17 + $0x90] sm:$0xff]  ;;  %v254_v38 = vld [vmem:[%s1304_s17 + $0x98] sm:$0xff] }
  0x24   : > { %1063 = vmatmul.mubr.msk.f32.gmra.mrb[4].mxu1 %vm279_vm0, %v260_v18  ;;  %1035 = vmatprep.mubr.msk.f32.mxu0 %vm279_vm0, %v241_v19 }
  0x25   : > { %1065 = vmatprep.mubr.msk.f32.mxu1 %vm279_vm0, %v261_v20 }
  0x27   : > { %1036 = vmatmul.mubr.msk.f32.gmra.mrb[6].mxu0 %vm279_vm0, %v242_v21 }
  0x28   : > { %1066 = vmatmul.mubr.msk.f32.gmra.mrb[6].mxu1 %vm279_vm0, %v262_v22  ;;  %1038 = vmatprep.mubr.msk.f32.mxu0 %vm279_vm0, %v243_v23 }
  0x29   : > { %1068 = vmatprep.mubr.msk.f32.mxu1 %vm279_vm0, %v263_v24 }
  0x2b   : > { %1039 = vmatmul.mubr.msk.f32.gmra.mrb[8].mxu0 %vm279_vm0, %v244_v25 }
  0x2c   : > { %1069 = vmatmul.mubr.msk.f32.gmra.mrb[8].mxu1 %vm279_vm0, %v264_v26  ;;  %1041 = vmatprep.mubr.msk.f32.mxu0 %vm279_vm0, %v245_v27 }
  0x2d   : > { %1071 = vmatprep.mubr.msk.f32.mxu1 %vm279_vm0, %v265_v28 }
  0x2f   : > { %1042 = vmatmul.mubr.msk.f32.gmra.mrb[10].mxu0 %vm279_vm0, %v246_v29 }
  0x30   : > { %1072 = vmatmul.mubr.msk.f32.gmra.mrb[10].mxu1 %vm279_vm0, %v266_v30  ;;  %1044 = vmatprep.mubr.msk.f32.mxu0 %vm279_vm0, %v247_v31 }
  0x33   : > { %1045 = vmatmul.mubr.msk.f32.gmra.mrb[12].mxu0 %vm279_vm0, %v248_v32 }
  0x34   : > { %1047 = vmatprep.mubr.msk.f32.mxu0 %vm279_vm0, %v249_v33 }
  0x37   : > { %1048 = vmatmul.mubr.msk.f32.gmra.mrb[14].mxu0 %vm279_vm0, %v250_v34 }
  0x38   : > { %1050 = vmatprep.mubr.msk.f32.mxu0 %vm279_vm0, %v251_v35 }
  0x3b   : > { %1051 = vmatmul.mubr.msk.f32.gmra.mrb[16].mxu0 %vm279_vm0, %v252_v36 }
  0x3c   : > { %1053 = vmatprep.mubr.msk.f32.mxu0 %vm279_vm0, %v253_v37 }
  0x3f   : > { %1054 = vmatmul.mubr.msk.f32.gmra.mrb[18].mxu0 %vm279_vm0, %v254_v38 }
  0xee   : > { %v1028_v40 = vpop.f32.mrb[0].mxu0 }
  0xef   : > { %v1058_v41 = vpop.f32.mrb[0].mxu1  ;;  %v446_v42 = vpop.f32.mrb[1].mxu0  ;;  %v452_v55 = vadd.f32 %v1028_v40, %v1383_v52 }
  0xf0   : > { %v546_v43 = vpop.f32.mrb[1].mxu1  ;;  %v552_v57 = vadd.f32 %v1058_v41, %v1383_v52  ;;  %v447_v59 = vadd.f32 %v1383_v52, %v446_v42 }
  0xf1   : > { %v547_v60 = vadd.f32 %v1383_v52, %v546_v43  ;;  %v606_v1 = vmax.f32 %v452_v55, 0.0 }
  0xf2   : > { %v1031_v44 = vpop.f32.mrb[2].mxu0  ;;  %v626_v2 = vmax.f32 %v552_v57, 0.0  ;;  %v605_v7 = vmax.f32 %v447_v59, 0.0 }
  0xf3   : > { %v1061_v45 = vpop.f32.mrb[2].mxu1  ;;  %v456_v46 = vpop.f32.mrb[3].mxu0  ;;  %v625_v8 = vmax.f32 %v547_v60, 0.0  ;;  %v462_v11 = vadd.f32 %v1031_v44, %v1383_v52 }
  0xf4   : > { %v556_v47 = vpop.f32.mrb[3].mxu1  ;;  %v562_v62 = vadd.f32 %v1061_v45, %v1383_v52  ;;  %v457_v12 = vadd.f32 %v1383_v52, %v456_v46 }
  0xf5   : > { %v557_v63 = vadd.f32 %v1383_v52, %v556_v47  ;;  %v608_v31 = vmax.f32 %v462_v11, 0.0 }
  0xf6   : > { %v1034_v48 = vpop.f32.mrb[4].mxu0  ;;  %v628_v16 = vmax.f32 %v562_v62, 0.0  ;;  %v607_v35 = vmax.f32 %v457_v12, 0.0 }
  0xf7   : > { %v1376_v49 = vpop.f32.mrb[4].mxu1  ;;  %v466_v50 = vpop.f32.mrb[5].mxu0  ;;  %v627_v17 = vmax.f32 %v557_v63, 0.0  ;;  %v472_v32 = vadd.f32 %v1034_v48, %v1383_v52 }
  0xf8   : > { %v1378_v51 = vpop.f32.mrb[5].mxu1  ;;  %v467_v36 = vadd.f32 %v1383_v52, %v466_v50 }
  0xf9   : > { %v610_v47 = vmax.f32 %v472_v32, 0.0 }
  0xfa   : > { %v1037_v53 = vpop.f32.mrb[6].mxu0  ;;  %v609_v50 = vmax.f32 %v467_v36, 0.0 }
  0xfb   : > { %v1385_v54 = vpop.f32.mrb[6].mxu1  ;;  %v476_v56 = vpop.f32.mrb[7].mxu0  ;;  %v482_v48 = vadd.f32 %v1037_v53, %v1383_v52 }
  0xfc   : > { %v1389_v58 = vpop.f32.mrb[7].mxu1  ;;  %v477_v57 = vadd.f32 %v1383_v52, %v476_v56 }
  0xfe   : > { %v1040_v61 = vpop.f32.mrb[8].mxu0 }
  0xff   : > { %v1070_v0 = vpop.f32.mrb[8].mxu1  ;;  %v492_v3 = vadd.f32 %v1040_v61, %v1383_v52  ;;  %v486_v4 = vpop.f32.mrb[9].mxu0  ;;  %v572_v61 = vadd.f32 %v1376_v49, %v1383_v52 }
 0x100   : > { %v592_v5 = vadd.f32 %v1070_v0, %v1383_v52  ;;  %v586_v6 = vpop.f32.mrb[9].mxu1  ;;  %v487_v9 = vadd.f32 %v1383_v52, %v486_v4  ;;  %v611_v4 = vmax.f32 %v477_v57, 0.0 }
 0x101   : > { %v587_v10 = vadd.f32 %v1383_v52, %v586_v6  ;;  %v614_v13 = vmax.f32 %v492_v3, 0.0 }
 0x102   : > { %v634_v14 = vmax.f32 %v592_v5, 0.0  ;;  %v613_v15 = vmax.f32 %v487_v9, 0.0  ;;  %v1043_v18 = vpop.f32.mrb[10].mxu0 }
 0x103   : > { %v633_v19 = vmax.f32 %v587_v10, 0.0  ;;  %v1073_v20 = vpop.f32.mrb[10].mxu1  ;;  %v1401_v21 = vmax.f32 %v606_v1, %v614_v13  ;;  %v502_v22 = vadd.f32 %v1043_v18, %v1383_v52  ;;  %v496_v23 = vpop.f32.mrb[11].mxu0  ;;  %v567_v1 = vadd.f32 %v1383_v52, %v1378_v51 }
 0x104   : > { %v650_v24 = vmax.f32 %v626_v2, %v634_v14  ;;  %v602_v25 = vadd.f32 %v1073_v20, %v1383_v52  ;;  %v596_v26 = vpop.f32.mrb[11].mxu1  ;;  %v1405_v27 = vmax.f32 %v605_v7, %v613_v15  ;;  %v497_v28 = vadd.f32 %v1383_v52, %v496_v23 }
 0x105   : > { %v649_v29 = vmax.f32 %v625_v8, %v633_v19  ;;  %v597_v30 = vadd.f32 %v1383_v52, %v596_v26  ;;  %v616_v33 = vmax.f32 %v502_v22, 0.0  ;;  %v612_v2 = vmax.f32 %v482_v48, 0.0 }
 0x106   : > { %v636_v34 = vmax.f32 %v602_v25, 0.0  ;;  %v615_v37 = vmax.f32 %v497_v28, 0.0  ;;  %v1046_v38 = vpop.f32.mrb[12].mxu0  ;;  %v630_v8 = vmax.f32 %v572_v61, 0.0  ;;  %v582_v51 = vadd.f32 %v1385_v54, %v1383_v52 }
 0x107   : > { %v635_v39 = vmax.f32 %v597_v30, 0.0  ;;  %v1411_v40 = vmax.f32 %v608_v31, %v616_v33  ;;  %v512_v41 = vadd.f32 %v1046_v38, %v1383_v52  ;;  %v506_v42 = vpop.f32.mrb[13].mxu0  ;;  %v629_v12 = vmax.f32 %v567_v1, 0.0 }
 0x108   : > { %v652_v43 = vmax.f32 %v628_v16, %v636_v34  ;;  %v1414_v44 = vmax.f32 %v607_v35, %v615_v37  ;;  %v507_v45 = vadd.f32 %v1383_v52, %v506_v42  ;;  %v577_v13 = vadd.f32 %v1383_v52, %v1389_v58 }
 0x109   : > { %v651_v46 = vmax.f32 %v627_v17, %v635_v39  ;;  %v618_v55 = vmax.f32 %v512_v41, 0.0  ;;  %v632_v20 = vmax.f32 %v582_v51, 0.0 }
 0x10a   : > { %v617_v59 = vmax.f32 %v507_v45, 0.0  ;;  %v1049_v60 = vpop.f32.mrb[14].mxu0  ;;  %v631_v58 = vmax.f32 %v577_v13, 0.0 }
 0x10b   : > { %v642_v62 = vmax.f32 %v610_v47, %v618_v55  ;;  %v522_v63 = vadd.f32 %v1049_v60, %v1383_v52  ;;  %v516_v0 = vpop.f32.mrb[15].mxu0 }
 0x10c   : > { %v641_v53 = vmax.f32 %v609_v50, %v617_v59  ;;  %v517_v56 = vadd.f32 %v1383_v52, %v516_v0 }
 0x10d   : > { %v658_v49 = vmax.f32 %v642_v62, %v650_v24  ;;  %v620_v3 = vmax.f32 %v522_v63, 0.0 }
 0x10e   : > { %v657_v5 = vmax.f32 %v641_v53, %v649_v29  ;;  %v619_v6 = vmax.f32 %v517_v56, 0.0  ;;  %v1052_v7 = vpop.f32.mrb[16].mxu0 }
 0x10f   : > { %667 = vst.msk [vmem:[%s1428_s11 + $0x28] sm:$0xff] %vm661_vm2, %v658_v49  ;;  %v644_v9 = vmax.f32 %v612_v2, %v620_v3  ;;  %v532_v10 = vadd.f32 %v1052_v7, %v1383_v52  ;;  %v526_v11 = vpop.f32.mrb[17].mxu0 }
 0x110   : > { %666 = vst.msk [vmem:[%s1428_s11 + $0x20] sm:$0xff] %vm661_vm2, %v657_v5  ;;  %v643_v14 = vmax.f32 %v611_v4, %v619_v6  ;;  %v527_v15 = vadd.f32 %v1383_v52, %v526_v11 }
 0x111   : > { %v660_v16 = vmax.f32 %v644_v9, %v652_v43  ;;  %v622_v17 = vmax.f32 %v532_v10, 0.0 }
 0x112   : > { %v659_v54 = vmax.f32 %v643_v14, %v651_v46  ;;  %v621_v18 = vmax.f32 %v527_v15, 0.0  ;;  %v1055_v19 = vpop.f32.mrb[18].mxu0 }
 0x113   : > { %669 = vst.msk [vmem:[%s1428_s11 + $0x38] sm:$0xff] %vm661_vm2, %v660_v16  ;;  %v646_v22 = vmax.f32 %v622_v17, %v630_v8  ;;  %v542_v23 = vadd.f32 %v1055_v19, %v1383_v52  ;;  %v536_v24 = vpop.f32.mrb[19].mxu0 }
 0x114   : > { %668 = vst.msk [vmem:[%s1428_s11 + $0x30] sm:$0xff] %vm661_vm2, %v659_v54  ;;  %v645_v25 = vmax.f32 %v621_v18, %v629_v12  ;;  %v537_v26 = vadd.f32 %v1383_v52, %v536_v24 }
 0x115   : > { %v654_v28 = vmax.f32 %v1401_v21, %v646_v22  ;;  %v624_v29 = vmax.f32 %v542_v23, 0.0 }
 0x116   : > { %v653_v30 = vmax.f32 %v1405_v27, %v645_v25  ;;  %v623_v31 = vmax.f32 %v537_v26, 0.0 }
 0x117   : > { %663 = vst.msk [vmem:[%s1428_s11 + $0x8] sm:$0xff] %vm661_vm2, %v654_v28  ;;  %v648_v32 = vmax.f32 %v624_v29, %v632_v20 }
 0x118   : > { %662 = vst.msk [vmem:[%s1428_s11] sm:$0xff] %vm661_vm2, %v653_v30  ;;  %v647_v33 = vmax.f32 %v623_v31, %v631_v58  ;;  %1076 = vmatprep.mubr.msk.f32.mxu1 %vm661_vm2, %v653_v30 }
 0x119   : > { %v656_v34 = vmax.f32 %v1411_v40, %v648_v32  ;;  %1077 = vmatmul.mubr.msk.f32.vlgmr.msra.gmra.mrb[12].mxu1 %vm661_vm2, %v654_v28 }
 0x11a   : > { %v655_v52 = vmax.f32 %v1414_v44, %v647_v33 }
 0x11b   : > { %665 = vst.msk [vmem:[%s1428_s11 + $0x18] sm:$0xff] %vm661_vm2, %v656_v34 }
 0x11c   : > { %664 = vst.msk [vmem:[%s1428_s11 + $0x10] sm:$0xff] %vm661_vm2, %v655_v52  ;;  %1079 = vmatprep.mubr.msk.f32.mxu1 %vm661_vm2, %v655_v52 }
 0x11d   : > { %1080 = vmatmul.mubr.msk.f32.gmra.mrb[14].mxu1 %vm661_vm2, %v656_v34 }
 0x11e   : > { %1082 = vmatprep.mubr.msk.f32.mxu1 %vm661_vm2, %v657_v5 }
 0x121   : > { %1083 = vmatmul.mubr.msk.f32.gmra.mrb[16].mxu1 %vm661_vm2, %v658_v49 }
 0x122   : > { %1085 = vmatprep.mubr.msk.f32.mxu1 %vm661_vm2, %v659_v54 }
 0x125   : > { %1086 = vmatmul.mubr.msk.f32.gmra.mrb[18].mxu1 %vm661_vm2, %v660_v16 }
 0x1ec   : > { %v1078_v21 = vpop.f32.mrb[12].mxu1 }
 0x1ed   : > { %v761_v27 = vpop.f32.mrb[13].mxu1 }
 0x1ee   : > { %v800_v35 = vadd.f32 %v1078_v21, %v761_v27 }
 0x1f0   : > { %v1081_v36 = vpop.f32.mrb[14].mxu1 }
 0x1f1   : > { %v771_v37 = vpop.f32.mrb[15].mxu1 }
 0x1f2   : > { %v801_v38 = vadd.f32 %v800_v35, %v771_v37 }
 0x1f4   : > { %v1084_v39 = vpop.f32.mrb[16].mxu1  ;;  %v802_v40 = vadd.f32 %v1081_v36, %v801_v38 }
 0x1f5   : > { %v781_v41 = vpop.f32.mrb[17].mxu1 }
 0x1f6   : > { %v803_v42 = vadd.f32 %v802_v40, %v781_v41 }
 0x1f8   : > { %v1087_v43 = vpop.f32.mrb[18].mxu1  ;;  %v804_v44 = vadd.f32 %v1084_v39, %v803_v42 }
 0x1f9   : > { %v791_v45 = vpop.f32.mrb[19].mxu1 }
 0x1fa   : > { %v805_v46 = vadd.f32 %v804_v44, %v791_v45 }
 0x1fc   : > { %v806_v47 = vadd.f32 %v1087_v43, %v805_v46 }
 0x1fe   : > { %v807_v48 = vrot.slane %v806_v47, 4 }
 0x200   : > { %v808_v55 = vadd.f32 %v807_v48, %v806_v47 }
 0x202   : > { %v809_v50 = vrot.slane %v808_v55, 2 }
 0x204   : > { %v810_v57 = vadd.f32 %v809_v50, %v808_v55 }
 0x206   : > { %v811_v59 = vrot.slane %v810_v57, 1 }
 0x208   : > { %v812_v60 = vadd.f32 %v811_v59, %v810_v57 }
 0x20a   : > { %813 = vst [vmem:[%s224_s14] sm:$0x1] %v812_v60 }
 0x20b   : > { %1154 = shalt.err (!%p1151_p3)
}
 0x20c   : > { %s1155_s7 = scalar_lea.hbm %s1472_s23, 16  ;;  %s1159_s10 = scalar_lea.hbm %s1519_s5, 32 }
 0x20d   : > { %p1156_p4 = scmp.ne.s32.totalorder %s1472_s23, %s1155_s7  ;;  %p1160_p9 = scmp.lt.u32.totalorder %s1472_s23, %s1519_s5 }
 0x20e   : > { %p1161_p10 = scmp.lt.u32.totalorder %s1159_s10, %s1155_s7  ;;  %p1163_p12 = scmp.lt.u32.totalorder %s1155_s7, %s1472_s23 }
 0x20f   : > { %p1157_p7 = pnand %p1156_p4, %p1274_p5 }
 0x210   : > { %p1162_p11 = por %p1161_p10, %p1160_p9 }
 0x211   : > { %p1158_p8 = pneg %p1157_p7 }
 0x212   : > { %p1164_p13 = por %p1163_p12, %p1162_p11 }
 0x214   : > { %p1165_p0 = pnand %p1164_p13, %p1158_p8 }
 0x216   : > { %1168 = shalt.err (!%p1165_p0)
}
 0x217   : > { %1102 = dma.vmem_to_hbm [thread:$0]  (%p1274_p5), %s1474_s15, 16, %s1472_s23, %s820_s25  }
 0x218 PF: > { %p1108_p1 = scmp.ge.s32.totalorder %s1203_s21, 2  ;;  %s855_s13 = sand.u32 1, %s1191_s18  }
 0x219   : > { %s856_s14 = scalar_lea.sflag [#allocation3], %s855_s13 }
 0x21a   : > { %p1105_p2 = pnand %p1108_p1, %p1278_p6 }
 0x21c   : > { %1186 = dma.done.wait (!%p1105_p2), %s856_s14, 16  }
 0x21d   : > { %1188 = vsyncadd (!%p1105_p2), %s856_s14, 4294967280  ;;  %p16_p3 = scmp.ge.s32.totalorder %s1261_s24, 4   ;;  %s1522_s18 = smov %s1195_s19 }
 0x21e   : > { %s1523_s19 = smov %s1199_s20  ;;  %s1524_s20 = smov %s1272_s27 }
 0x21f   : > { %s1525_s21 = smov %s1261_s24  ;;  %18 = sbr.rel (!%p16_p3) target bundleno = 3 (0x3), region = 83 }
 0x226   :  { %860 = vsyncpa [#allocation3], 1 }
 0x227   :  { %862 = vsyncpa [#allocation3 + $0x1], 1 }

</bundles_post_ra>
